<compile_context>
chip_gen: v7x
topology: tpu7x:2x2x1
jax: 0.10.0
libtpu: 0.0.40
codegen_flags: <defaults>
</compile_context>

<pallas_src>
import jax
import jax.numpy as jnp
from jax.experimental import pallas as pl
from jax.experimental.pallas import tpu as pltpu

LN_EPS = 1e-5    # nn.LayerNorm default eps
L2_EPS = 1e-12   # F.normalize default eps


def _vmem_cap_bytes():
    """v7x has 64 MiB/TC: keep the scoped limit at <= ~32-40 MiB everywhere."""
    try:
        cap = pltpu.get_tpu_info().vmem_capacity_bytes
        return int(min(40 << 20, max(16 << 20, cap // 2)))
    except Exception:
        return 40 << 20


_VMEM_CAP = _vmem_cap_bytes()


# ----------------------------------------------------------------------------
# Kernel 1: Linear + LayerNorm + L2-normalize (nn.Sequential head + F.normalize)
# ----------------------------------------------------------------------------
def _head_kernel(x_ref, w_ref, b_ref, g_ref, beta_ref, o_ref):
    # x: [TN, H] bf16 tile, w: [H, E] bf16 (VMEM-resident across the grid),
    # b/g/beta: [1, E] f32 (resident), o: [TN, E] bf16.
    y = jnp.dot(x_ref[...], w_ref[...], preferred_element_type=jnp.float32)
    y = y + b_ref[...]
    # LayerNorm over the last dim (biased variance, matches PyTorch),
    # one-pass stats: var = E[y^2] - E[y]^2.
    mu = jnp.mean(y, axis=-1, keepdims=True)
    ms = jnp.mean(y * y, axis=-1, keepdims=True)
    var = jnp.maximum(ms - mu * mu, 0.0)
    yn = (y - mu) * jax.lax.rsqrt(var + LN_EPS)
    yn = yn * g_ref[...] + beta_ref[...]
    # F.normalize(p=2): x / max(||x||_2, eps)  ==  x * rsqrt(max(sumsq, eps^2))
    sumsq = jnp.sum(yn * yn, axis=-1, keepdims=True)
    inv = jax.lax.rsqrt(jnp.maximum(sumsq, L2_EPS * L2_EPS))
    o_ref[...] = (yn * inv).astype(o_ref.dtype)


def embedding_head(x, w, b, gamma, beta, *, tile_rows=1024,
                   out_dtype=jnp.bfloat16):
    """x: [N, H] -> [N, E] (Linear + LayerNorm + L2 normalize), row-tiled."""
    N, H = x.shape
    E = w.shape[1]

    tn = N if N <= tile_rows else tile_rows      # tile_rows is a multiple of 8
    grid_n = pl.cdiv(N, tn)                      # ragged last block handled by Pallas

    x_bf = x.astype(jnp.bfloat16)                # bf16 MXU inputs, f32 accumulation
    w_bf = w.astype(jnp.bfloat16)
    b2 = b.reshape(1, E).astype(jnp.float32)
    g2 = gamma.reshape(1, E).astype(jnp.float32)
    bt2 = beta.reshape(1, E).astype(jnp.float32)

    # Budget: double-buffered bf16 x/out tiles + resident bf16 weights
    #         + in-kernel f32 temporaries (y, y*y, yn, yn*yn) + vectors + slack.
    vmem_bytes = (
        2 * tn * H * 2
        + 2 * tn * E * 2
        + H * E * 2
        + 4 * tn * E * 4
        + 8 * E * 4
        + (2 << 20)
    )
    vmem_bytes = int(min(max(vmem_bytes, 8 << 20), _VMEM_CAP))

    out = pl.pallas_call(
        _head_kernel,
        out_shape=jax.ShapeDtypeStruct((N, E), out_dtype),
        grid=(grid_n,),
        in_specs=[
            pl.BlockSpec((tn, H), lambda i: (i, 0)),
            pl.BlockSpec((H, E), lambda i: (0, 0)),   # weights stay VMEM-resident
            pl.BlockSpec((1, E), lambda i: (0, 0)),
            pl.BlockSpec((1, E), lambda i: (0, 0)),
            pl.BlockSpec((1, E), lambda i: (0, 0)),
        ],
        out_specs=pl.BlockSpec((tn, E), lambda i: (i, 0)),
        compiler_params=pltpu.CompilerParams(
            dimension_semantics=("parallel",),
            vmem_limit_bytes=vmem_bytes),
    )(x_bf, w_bf, b2, g2, bt2)
    return out


# ----------------------------------------------------------------------------
# Kernel 2: COIL pairwise scoring (tok_score_pair + cls score, 'full' mode)
# ----------------------------------------------------------------------------
def _coil_score_kernel(q_tok_ref, d_tok_ref, q_ids_ref, d_ids_ref,
                       q_mask_ref, q_cls_ref, d_cls_ref, o_ref):
    # Batch-block of TB pairs:
    #   q_tok: [TB, Lq, E] bf16   d_tok: [TB, Ld, E] bf16
    #   q_ids: [TB, Lq] i32       d_ids: [TB, Ld] i32
    #   q_mask:[TB, Lq] f32 (SEP and position 0 already zeroed in the wrapper)
    #   q_cls/d_cls: [TB, Ec] bf16   o: [TB, 1] f32
    scores = jnp.einsum('bqe,bke->bqk', q_tok_ref[...], d_tok_ref[...],
                        preferred_element_type=jnp.float32)            # [TB,Lq,Ld]
    match = q_ids_ref[...][:, :, None] == d_ids_ref[...][:, None, :]   # [TB,Lq,Ld]
    tok = jnp.max(jnp.where(match, scores, 0.0), axis=-1)              # [TB,Lq]
    tok_score = jnp.sum(tok * q_mask_ref[...], axis=-1, keepdims=True)  # [TB,1]
    cls = (q_cls_ref[...].astype(jnp.float32)
           * d_cls_ref[...].astype(jnp.float32))
    cls_score = jnp.sum(cls, axis=-1, keepdims=True)                    # [TB,1]
    o_ref[...] = tok_score + cls_score


def coil_score_pair(q_tok, d_tok, q_ids, d_ids, q_mask, q_cls, d_cls,
                    *, batch_block=16):
    B, Lq, E = q_tok.shape
    _, Ld, _ = d_tok.shape
    Ec = q_cls.shape[1]

    tb = B if B <= batch_block else batch_block   # batch_block is a multiple of 8
    grid_b = pl.cdiv(B, tb)                       # ragged last block handled by Pallas

    q_tok = q_tok.astype(jnp.bfloat16)            # bf16 storage, f32 accumulation
    d_tok = d_tok.astype(jnp.bfloat16)
    q_cls = q_cls.astype(jnp.bfloat16)
    d_cls = d_cls.astype(jnp.bfloat16)
    q_ids = q_ids.astype(jnp.int32)
    d_ids = d_ids.astype(jnp.int32)
    q_mask = q_mask.astype(jnp.float32)

    # Budget: double-buffered bf16 token blocks + f32 [tb,Lq,Ld] intermediates
    #         + ids/mask/cls blocks + slack.
    vmem_bytes = (
        2 * tb * (Lq + Ld) * E * 2
        + 3 * tb * Lq * Ld * 4
        + 4 * tb * (Lq + Ld + 2 * Ec) * 4
        + (2 << 20)
    )
    vmem_bytes = int(min(max(vmem_bytes, 8 << 20), _VMEM_CAP))

    out = pl.pallas_call(
        _coil_score_kernel,
        out_shape=jax.ShapeDtypeStruct((B, 1), jnp.float32),
        grid=(grid_b,),
        in_specs=[
            pl.BlockSpec((tb, Lq, E), lambda b: (b, 0, 0)),
            pl.BlockSpec((tb, Ld, E), lambda b: (b, 0, 0)),
            pl.BlockSpec((tb, Lq), lambda b: (b, 0)),
            pl.BlockSpec((tb, Ld), lambda b: (b, 0)),
            pl.BlockSpec((tb, Lq), lambda b: (b, 0)),
            pl.BlockSpec((tb, Ec), lambda b: (b, 0)),
            pl.BlockSpec((tb, Ec), lambda b: (b, 0)),
        ],
        out_specs=pl.BlockSpec((tb, 1), lambda b: (b, 0)),
        compiler_params=pltpu.CompilerParams(
            dimension_semantics=("parallel",),
            vmem_limit_bytes=vmem_bytes),
    )(q_tok, d_tok, q_ids, d_ids, q_mask, q_cls, d_cls)
    return out.reshape(B)


# ----------------------------------------------------------------------------
# Plain-JAX glue reproducing the module structure
# ----------------------------------------------------------------------------
def mask_sep(attention_mask):
    """Scatter zeros at the SEP position (args.no_sep == True)."""
    B = attention_mask.shape[0]
    sep_pos = jnp.sum(attention_mask, axis=1).astype(jnp.int32) - 1
    return attention_mask.at[jnp.arange(B), sep_pos].set(0)


def embed(params, last_hidden_state):
    """COIL.embed minus the BERT encoder (hidden states supplied directly)."""
    B, L, H = last_hidden_state.shape
    cls_emb = embedding_head(last_hidden_state[:, 0],
                             params['cls_w'], params['cls_b'],
                             params['cls_gamma'], params['cls_beta'])     # [B, Ec]
    tok_embs = embedding_head(last_hidden_state.reshape(B * L, H),
                              params['tok_w'], params['tok_b'],
                              params['tok_gamma'], params['tok_beta'])     # [B*L, E]
    return cls_emb, tok_embs.reshape(B, L, -1)


def embed_pair(params, q_hidden, d_hidden):
    """Embed Q and D together: 2 head pallas_calls per forward instead of 4."""
    B, L, H = q_hidden.shape
    cls_in = jnp.concatenate([q_hidden[:, 0], d_hidden[:, 0]], axis=0)     # [2B, H]
    cls_out = embedding_head(cls_in, params['cls_w'], params['cls_b'],
                             params['cls_gamma'], params['cls_beta'])
    q_cls, d_cls = cls_out[:B], cls_out[B:]
    tok_in = jnp.concatenate([q_hidden.reshape(B * L, H),
                              d_hidden.reshape(B * L, H)], axis=0)         # [2BL, H]
    tok_out = embedding_head(tok_in, params['tok_w'], params['tok_b'],
                             params['tok_gamma'], params['tok_beta'])
    q_tok = tok_out[:B * L].reshape(B, L, -1)
    d_tok = tok_out[B * L:].reshape(B, L, -1)
    return q_cls, q_tok, d_cls, d_tok


def coil_forward(params, Q, D):
    """Q/D: dicts with 'input_ids', 'attention_mask', 'hidden_states'."""
    q_cls, q_tok, d_cls, d_tok = embed_pair(params, Q['hidden_states'],
                                            D['hidden_states'])
    q_mask = mask_sep(Q['attention_mask']).astype(jnp.float32)
    # Fold the `[:, 1:]` of tok_score_pair into the mask: drop query position 0.
    q_mask = q_mask.at[:, 0].set(0.0)
    scores = coil_score_pair(q_tok, d_tok,
                             Q['input_ids'].astype(jnp.int32),
                             D['input_ids'].astype(jnp.int32),
                             q_mask, q_cls, d_cls)
    return scores   # [B] per-pair COIL scores ('full' score type)


# ----------------------------------------------------------------------------
# Pure-JAX reference (mirrors the PyTorch module; embeddings stored bf16 like
# the kernel path, scoring math in f32)
# ----------------------------------------------------------------------------
def _ref_head(x, w, b, gamma, beta):
    y = jnp.dot(x.astype(jnp.bfloat16), w.astype(jnp.bfloat16),
                preferred_element_type=jnp.float32) + b
    mu = jnp.mean(y, axis=-1, keepdims=True)
    var = jnp.mean((y - mu) ** 2, axis=-1, keepdims=True)
    yn = (y - mu) * jax.lax.rsqrt(var + LN_EPS) * gamma + beta
    nrm = jnp.sqrt(jnp.sum(yn * yn, axis=-1, keepdims=True))
    return yn / jnp.maximum(nrm, L2_EPS)


def _ref_forward(params, Q, D):
    B, L, H = Q['hidden_states'].shape
    q_cls = _ref_head(Q['hidden_states'][:, 0], params['cls_w'], params['cls_b'],
                      params['cls_gamma'], params['cls_beta'])
    d_cls = _ref_head(D['hidden_states'][:, 0], params['cls_w'], params['cls_b'],
                      params['cls_gamma'], params['cls_beta'])
    q_tok = _ref_head(Q['hidden_states'].reshape(B * L, H), params['tok_w'],
                      params['tok_b'], params['tok_gamma'],
                      params['tok_beta']).reshape(B, L, -1)
    d_tok = _ref_head(D['hidden_states'].reshape(B * L, H), params['tok_w'],
                      params['tok_b'], params['tok_gamma'],
                      params['tok_beta']).reshape(B, L, -1)
    # Kernel path stores embeddings in bf16 by design; mirror the storage dtype.
    q_cls = q_cls.astype(jnp.bfloat16).astype(jnp.float32)
    d_cls = d_cls.astype(jnp.bfloat16).astype(jnp.float32)
    q_tok = q_tok.astype(jnp.bfloat16).astype(jnp.float32)
    d_tok = d_tok.astype(jnp.bfloat16).astype(jnp.float32)
    q_mask = mask_sep(Q['attention_mask']).astype(jnp.float32)
    exact = (Q['input_ids'][:, :, None] == D['input_ids'][:, None, :]).astype(jnp.float32)
    scores = jnp.einsum('bqe,bke->bqk', q_tok, d_tok)
    tok = jnp.max(scores * exact, axis=-1)
    tok_scores = jnp.sum((tok * q_mask)[:, 1:], axis=-1)
    cls_scores = jnp.sum(q_cls * d_cls, axis=-1)
    return tok_scores + cls_scores


# ----------------------------------------------------------------------------
if __name__ == "__main__":
    B, L, H = 2, 16, 32          # batch, seq, BERT hidden size
    E_TOK, E_CLS = 32, 32        # args.tok_embedding_dim / args.cls_embedding_dim
    VOCAB = 50
    PAD_ID = 0                   # padded positions carry the PAD id (as a tokenizer would)

    key = jax.random.PRNGKey(0)
    keys = jax.random.split(key, 10)

    params = {
        'tok_w': 0.02 * jax.random.normal(keys[0], (H, E_TOK), jnp.float32),
        'tok_b': jnp.zeros((E_TOK,), jnp.float32),
        'tok_gamma': jnp.ones((E_TOK,), jnp.float32),
        'tok_beta': jnp.zeros((E_TOK,), jnp.float32),
        'cls_w': 0.02 * jax.random.normal(keys[1], (H, E_CLS), jnp.float32),
        'cls_b': jnp.zeros((E_CLS,), jnp.float32),
        'cls_gamma': jnp.ones((E_CLS,), jnp.float32),
        'cls_beta': jnp.zeros((E_CLS,), jnp.float32),
    }

    # small vocab so query/doc ids overlap (exact-match interaction non-trivial)
    q_ids_raw = jax.random.randint(keys[2], (B, L), 1, VOCAB, jnp.int32)
    d_ids_raw = jax.random.randint(keys[3], (B, L), 1, VOCAB, jnp.int32)
    # attention masks: lengths 16 and 12 (trailing padding)
    lengths = jnp.array([16, 12], jnp.int32)
    pos = jnp.arange(L)[None, :]
    q_mask = (pos < lengths[:, None]).astype(jnp.int32)
    d_mask = (pos < lengths[:, None]).astype(jnp.int32)
    # padded positions get the PAD id so they never exact-match real tokens
    q_ids = jnp.where(q_mask == 1, q_ids_raw, PAD_ID)
    d_ids = jnp.where(d_mask == 1, d_ids_raw, PAD_ID)

    # TODO(synk): synthetic stand-in for BERT last_hidden_state
    q_hidden = jax.random.normal(keys[4], (B, L, H), jnp.float32)
    d_hidden = jax.random.normal(keys[5], (B, L, H), jnp.float32)

    Q = {'input_ids': q_ids, 'attention_mask': q_mask, 'hidden_states': q_hidden}
    D = {'input_ids': d_ids, 'attention_mask': d_mask, 'hidden_states': d_hidden}

    scores = coil_forward(params, Q, D)
    jax.block_until_ready(scores)
    assert scores.shape == (B,)
    assert bool(jnp.all(jnp.isfinite(scores)))

    ref = _ref_forward(params, Q, D)
    assert bool(jnp.allclose(scores, ref, rtol=5e-2, atol=5e-2)), (scores, ref)

    print("KERNEL_OK")
</pallas_src>

<mosaic_0001>
module attributes {stable_mosaic.version = 11 : i64} {
  func.func @_head_kernel(%arg0: i32, %arg1: memref<4x32xbf16, #tpu.memory_space<vmem>>, %arg2: memref<32x32xbf16, #tpu.memory_space<vmem>>, %arg3: memref<1x32xf32, #tpu.memory_space<vmem>>, %arg4: memref<1x32xf32, #tpu.memory_space<vmem>>, %arg5: memref<1x32xf32, #tpu.memory_space<vmem>>, %arg6: memref<4x32xbf16, #tpu.memory_space<vmem>>) attributes {dimension_semantics = [#tpu.dimension_semantics<parallel>], iteration_bounds = array<i64: 1>, scalar_prefetch = 0 : i64, scratch_operands = 0 : i64, tpu.core_type = #tpu.core_type<tc>, window_params = [{transform_indices = @transform_0, window_bounds = array<i64: 4, 32>}, {pipeline_mode = #tpu.pipeline_mode<synchronous>, transform_indices = @transform_1, window_bounds = array<i64: 32, 32>}, {pipeline_mode = #tpu.pipeline_mode<synchronous>, transform_indices = @transform_2, window_bounds = array<i64: 1, 32>}, {pipeline_mode = #tpu.pipeline_mode<synchronous>, transform_indices = @transform_3, window_bounds = array<i64: 1, 32>}, {pipeline_mode = #tpu.pipeline_mode<synchronous>, transform_indices = @transform_4, window_bounds = array<i64: 1, 32>}, {transform_indices = @transform_5, window_bounds = array<i64: 4, 32>}]} {
    %c0 = arith.constant 0 : index
    %c0_0 = arith.constant 0 : index
    %0 = vector.load %arg1[%c0, %c0_0] : memref<4x32xbf16, #tpu.memory_space<vmem>>, vector<4x32xbf16>
    %c0_1 = arith.constant 0 : index
    %c0_2 = arith.constant 0 : index
    %1 = vector.load %arg2[%c0_1, %c0_2] : memref<32x32xbf16, #tpu.memory_space<vmem>>, vector<32x32xbf16>
    %cst = arith.constant dense<0.000000e+00> : vector<4x32xf32>
    %2 = tpu.matmul %0, %1, %cst {dimension_numbers = #tpu.dot_dimension_numbers<[1], [0], [0], [1], [0, 0, 1, 1], [], []>} : vector<4x32xbf16>, vector<32x32xbf16>, vector<4x32xf32> -> vector<4x32xf32>
    %c0_3 = arith.constant 0 : index
    %c0_4 = arith.constant 0 : index
    %3 = vector.load %arg3[%c0_3, %c0_4] : memref<1x32xf32, #tpu.memory_space<vmem>>, vector<1x32xf32>
    %4 = vector.broadcast %3 : vector<1x32xf32> to vector<4x32xf32>
    %5 = arith.addf %2, %4 : vector<4x32xf32>
    %cst_5 = arith.constant dense<0.000000e+00> : vector<4xf32>
    %6 = vector.multi_reduction <add>, %5, %cst_5 [1] : vector<4x32xf32> to vector<4xf32>
    %7 = vector.shape_cast %6 : vector<4xf32> to vector<4x1xf32>
    %cst_6 = arith.constant 3.200000e+01 : f32
    %8 = vector.broadcast %cst_6 : f32 to vector<4x1xf32>
    %9 = arith.divf %7, %8 : vector<4x1xf32>
    %10 = arith.mulf %5, %5 : vector<4x32xf32>
    %cst_7 = arith.constant dense<0.000000e+00> : vector<4xf32>
    %11 = vector.multi_reduction <add>, %10, %cst_7 [1] : vector<4x32xf32> to vector<4xf32>
    %12 = vector.shape_cast %11 : vector<4xf32> to vector<4x1xf32>
    %cst_8 = arith.constant 3.200000e+01 : f32
    %13 = vector.broadcast %cst_8 : f32 to vector<4x1xf32>
    %14 = arith.divf %12, %13 : vector<4x1xf32>
    %15 = arith.mulf %9, %9 : vector<4x1xf32>
    %16 = arith.subf %14, %15 : vector<4x1xf32>
    %cst_9 = arith.constant 0.000000e+00 : f32
    %17 = vector.broadcast %cst_9 : f32 to vector<4x1xf32>
    %18 = arith.maximumf %16, %17 : vector<4x1xf32>
    %19 = vector.broadcast %9 : vector<4x1xf32> to vector<4x32xf32>
    %20 = arith.subf %5, %19 : vector<4x32xf32>
    %cst_10 = arith.constant 9.99999974E-6 : f32
    %21 = vector.broadcast %cst_10 : f32 to vector<4x1xf32>
    %22 = arith.addf %18, %21 : vector<4x1xf32>
    %23 = math.rsqrt %22 : vector<4x1xf32>
    %24 = vector.broadcast %23 : vector<4x1xf32> to vector<4x32xf32>
    %25 = arith.mulf %20, %24 : vector<4x32xf32>
    %c0_11 = arith.constant 0 : index
    %c0_12 = arith.constant 0 : index
    %26 = vector.load %arg4[%c0_11, %c0_12] : memref<1x32xf32, #tpu.memory_space<vmem>>, vector<1x32xf32>
    %27 = vector.broadcast %26 : vector<1x32xf32> to vector<4x32xf32>
    %28 = arith.mulf %25, %27 : vector<4x32xf32>
    %c0_13 = arith.constant 0 : index
    %c0_14 = arith.constant 0 : index
    %29 = vector.load %arg5[%c0_13, %c0_14] : memref<1x32xf32, #tpu.memory_space<vmem>>, vector<1x32xf32>
    %30 = vector.broadcast %29 : vector<1x32xf32> to vector<4x32xf32>
    %31 = arith.addf %28, %30 : vector<4x32xf32>
    %32 = arith.mulf %31, %31 : vector<4x32xf32>
    %cst_15 = arith.constant dense<0.000000e+00> : vector<4xf32>
    %33 = vector.multi_reduction <add>, %32, %cst_15 [1] : vector<4x32xf32> to vector<4xf32>
    %34 = vector.shape_cast %33 : vector<4xf32> to vector<4x1xf32>
    %cst_16 = arith.constant 1.000000e-24 : f32
    %35 = vector.broadcast %cst_16 : f32 to vector<4x1xf32>
    %36 = arith.maximumf %34, %35 : vector<4x1xf32>
    %37 = math.rsqrt %36 : vector<4x1xf32>
    %38 = vector.broadcast %37 : vector<4x1xf32> to vector<4x32xf32>
    %39 = arith.mulf %31, %38 : vector<4x32xf32>
    %40 = arith.truncf %39 : vector<4x32xf32> to vector<4x32xbf16>
    %c0_17 = arith.constant 0 : index
    %c0_18 = arith.constant 0 : index
    %41 = vector.load %arg6[%c0_17, %c0_18] : memref<4x32xbf16, #tpu.memory_space<vmem>>, vector<4x32xbf16>
    tpu.vector_store %arg6[%c0_17, %c0_18], %40 {strides = array<i32>} : memref<4x32xbf16, #tpu.memory_space<vmem>>, vector<4x32xbf16>,
    return
  }
  func.func @transform_0(%arg0: i32) -> (i32, i32) {
    %c0_i32 = arith.constant 0 : i32
    %c0_i32_0 = arith.constant 0 : i32
    return %arg0, %c0_i32 : i32, i32
  }
  func.func @transform_1(%arg0: i32) -> (i32, i32) {
    %c0_i32 = arith.constant 0 : i32
    %c0_i32_0 = arith.constant 0 : i32
    %c0_i32_1 = arith.constant 0 : i32
    return %c0_i32, %c0_i32_0 : i32, i32
  }
  func.func @transform_2(%arg0: i32) -> (i32, i32) {
    %c0_i32 = arith.constant 0 : i32
    %c0_i32_0 = arith.constant 0 : i32
    %c0_i32_1 = arith.constant 0 : i32
    return %c0_i32, %c0_i32_0 : i32, i32
  }
  func.func @transform_3(%arg0: i32) -> (i32, i32) {
    %c0_i32 = arith.constant 0 : i32
    %c0_i32_0 = arith.constant 0 : i32
    %c0_i32_1 = arith.constant 0 : i32
    return %c0_i32, %c0_i32_0 : i32, i32
  }
  func.func @transform_4(%arg0: i32) -> (i32, i32) {
    %c0_i32 = arith.constant 0 : i32
    %c0_i32_0 = arith.constant 0 : i32
    %c0_i32_1 = arith.constant 0 : i32
    return %c0_i32, %c0_i32_0 : i32, i32
  }
  func.func @transform_5(%arg0: i32) -> (i32, i32) {
    %c0_i32 = arith.constant 0 : i32
    %c0_i32_0 = arith.constant 0 : i32
    return %arg0, %c0_i32 : i32, i32
  }
}

</mosaic_0001>

<bundles_post_ra>
// kernel: tpu_custom_call.1
= control target key start
LH: loop header
LB: loop body
LE: loop exit
PB: predicated region body
PF: predicated region fallthrough
CT: control target
= control target key end

     0   :  { %10 = vsyncpa [#allocation3], 0  ;;  %s370_s0 = inlined_call_operand.hbm [shape: bf16[4,32], index: 0, kind: input, shape index: {}]   ;;  %s371_s1 = inlined_call_operand.hbm [shape: bf16[32,32], index: 1, kind: input, shape index: {}]   ;;  %s372_s2 = inlined_call_operand.vmem [shape: f32[1,32], index: 2, kind: input, shape index: {}]   ;;  %s373_s3 = inlined_call_operand.vmem [shape: f32[1,32], index: 3, kind: input, shape index: {}]   ;;  %s374_s4 = inlined_call_operand.vmem [shape: f32[1,32], index: 4, kind: input, shape index: {}]   ;;  %s375_s5 = inlined_call_operand.hbm [shape: bf16[4,32], index: 5, kind: output, shape index: {}]  }
   0x1   :  { %11 = vsyncpa [#allocation6], 0 }
   0x2   :  { %12 = vsyncpa [#allocation4], 0  ;;  %s278_s18 = smov [#allocation2]   ;;  %s279_s20 = smov [#allocation5]  }
   0x3   :  { %s19_s19 = sshll.u32 %s278_s18, 4  ;;  %s28_s21 = sshll.u32 %s279_s20, 4  ;;  %s20_s19 = int_to_ptr.vmem [resolvable:$true] %s19_s19  ;;  %s315_s21 = int_to_ptr.vmem [resolvable:$true] %s28_s21 }
   0x4   :  { %s206_s24 = scalar_lea.hbm %s370_s0, 32 }
   0x5   :  { %p207_p0 = scmp.ne.s32.totalorder %s370_s0, %s206_s24  ;;  %p210_p1 = scmp.lt.u32.totalorder %s206_s24, %s370_s0 }
   0x7   :  { %p212_p2 = pnand %p210_p1, %p207_p0 }
   0x9   :  { %215 = shalt.err (!%p212_p2)
}
   0xa   :  { %s216_s29 = scalar_lea.vmem %s20_s19, 32  ;;  %p221_p4 = scmp.lt.s32.totalorder %s20_s19, %s20_s19 }
   0xb   :  { %p217_p3 = scmp.ne.s32.totalorder %s20_s19, %s216_s29  ;;  %p222_p5 = scmp.lt.s32.totalorder %s216_s29, %s216_s29 }
   0xd   :  { %p223_p6 = por %p222_p5, %p221_p4 }
   0xf   :  { %p224_p7 = pnand %p223_p6, %p217_p3 }
  0x11   :  { %227 = shalt.err (!%p224_p7)
}
  0x12   :  { %22 = dma.hbm_to_vmem [thread:$0]  %s370_s0, 32, %s20_s19, [#allocation3]  }
  0x13   :  { %s228_s9 = scalar_lea.hbm %s371_s1, 256 }
  0x14   :  { %p229_p8 = scmp.ne.s32.totalorder %s371_s1, %s228_s9  ;;  %p232_p9 = scmp.lt.u32.totalorder %s228_s9, %s371_s1 }
  0x16   :  { %p234_p10 = pnand %p232_p9, %p229_p8 }
  0x18   :  { %237 = shalt.err (!%p234_p10)
}
  0x19   :  { %s238_s14 = scalar_lea.vmem %s315_s21, 256  ;;  %p243_p12 = scmp.lt.s32.totalorder %s315_s21, %s315_s21 }
  0x1a   :  { %p239_p11 = scmp.ne.s32.totalorder %s315_s21, %s238_s14  ;;  %p244_p13 = scmp.lt.s32.totalorder %s238_s14, %s238_s14 }
  0x1c   :  { %p245_p0 = por %p244_p13, %p243_p12 }
  0x1e   :  { %p246_p1 = pnand %p245_p0, %p239_p11 }
  0x20   :  { %249 = shalt.err (!%p246_p1)
}
  0x21   :  { %s280_s0 = smov 64   ;;  %s281_s15 = smov 4  }
  0x22   :  { %34 = dma.hbm_to_vmem [thread:$0]  %s371_s1, 256, %s315_s21, [#allocation6], %s280_s0, %s280_s0, %s281_s15  }
  0x23   :  { %272 = dma.done.wait [#allocation3], 32  }
  0x24   :  { %273 = vsyncadd [#allocation3], 4294967264 }
  0x25   :  { %274 = dma.done.wait [#allocation6], 256  }
  0x26   :  { %275 = vsyncadd [#allocation6], 4294967040  ;;  %v282_v0 = vmov 0.0   ;;  %vm283_vm0 = vmmov 0   ;;  %v200_v1 = vld [vmem:[#allocation5] sm:$0xff]   ;;  %v201_v2 = vld [vmem:[#allocation5 + $0x8] sm:$0xff]  }
  0x27   :  { %185 = vmatprep.subr.bf16.mxu0 %v282_v0  ;;  %189 = vmatprep.mubr.msk.bf16.mxu0 %vm283_vm0, %v282_v0  ;;  %v48_v3 = vld [vmem:[#allocation2] sm:$0x3]  ;;  %vm72_vm1 = vcmask 261120   ;;  %vm116_vm2 = vcmask 257024   ;;  %s284_s22 = smov [#allocation7]   ;;  %vm158_vm3 = vcmask 254976  }
  0x28   :  { %186 = vmatpush3.bf16.msra.mxu0 %v200_v1  ;;  %v176_v4 = vld [vmem:[%s372_s2] ss:$0 sm:$0xff]  ;;  %s166_s23 = sshll.u32 %s284_s22, 4  ;;  %s167_s23 = int_to_ptr.vmem [resolvable:$true] %s166_s23 }
  0x29   :  { %187 = vmatprep.subr.bf16.mxu0 %v282_v0  ;;  %v180_v23 = vld [vmem:[%s373_s3] ss:$0 sm:$0xff]  ;;  %s250_s3 = scalar_lea.vmem %s167_s23, 32  ;;  %p255_p3 = scmp.lt.s32.totalorder %s167_s23, %s167_s23 }
  0x2a   :  { %v181_v25 = vld [vmem:[%s374_s4] ss:$0 sm:$0xff]  ;;  %p251_p2 = scmp.ne.s32.totalorder %s167_s23, %s250_s3  ;;  %p256_p4 = scmp.lt.s32.totalorder %s250_s3, %s250_s3 }
  0x2c   :  { %188 = vmatpush3.bf16.msra.mxu0 %v201_v2  ;;  %p257_p5 = por %p256_p4, %p255_p3 }
  0x2e   :  { %p258_p6 = pnand %p257_p5, %p251_p2 }
  0x2f   :  { %190 = vmatmul.mubr.msk.bf16.vlgmr.msra.gmra.mrb[0].mxu0 %vm72_vm1, %v48_v3 }
 0x102   :  { %v110_v5 = vpop.f32.mrb[0].mxu0 }
 0x103   :  { %v111_v6 = vadd.f32 %v176_v4, %v110_v5  ;;  %v191_v7 = vpop.f32.mrb[1].mxu0 }
 0x104   :  { %v113_v8 = vpop.f32.mrb[2].mxu0 }
 0x105   :  { %v192_v9 = vpop.f32.mrb[3].mxu0  ;;  %v117_v10 = vsel %vm116_vm2, %v111_v6, 0.0  ;;  %v122_v11 = vmul.f32 %v111_v6, %v111_v6 }
 0x106   :  { %118 = vadd.xlane.f32.xlu0 %v117_v10 }
 0x107   :  { %v123_v12 = vsel %vm116_vm2, %v122_v11, 0.0 }
 0x10a   :  { %124 = vadd.xlane.f32.xlu0 %v123_v12 }
 0x193   :  { %v119_v13 = vpop.xlane.xlu0 %118 }
 0x194   :  { %v121_v14 = vmul.f32 0.03125, %v119_v13 }
 0x196   :  { %v127_v16 = vmul.f32 %v121_v14, %v121_v14  ;;  %v130_v21 = vsub.f32 %v111_v6, %v121_v14 }
 0x197   :  { %v125_v15 = vpop.xlane.xlu0 %124 }
 0x198   :  { %v126_v17 = vmul.f32 0.03125, %v125_v15 }
 0x19a   :  { %v128_v18 = vsub.f32 %v126_v17, %v127_v16 }
 0x19c   :  { %v129_v19 = vmax.f32 %v128_v18, 0.0 }
 0x19e   :  { %v131_v20 = vadd.f32 1e-05, %v129_v19 }
 0x1a0   :  { %202 = vrsqrt.f32 %v131_v20 }
 0x1aa   :  { %v203_v22 = vpop.eup %202 }
 0x1ab   :  { %v133_v24 = vmul.f32 %v203_v22, %v130_v21 }
 0x1ad   :  { %v141_v26 = vmul.f32 %v180_v23, %v133_v24 }
 0x1af   :  { %v149_v27 = vadd.f32 %v181_v25, %v141_v26 }
 0x1b1   :  { %v150_v28 = vmul.f32 %v149_v27, %v149_v27 }
 0x1b3   :  { %v151_v29 = vsel %vm116_vm2, %v150_v28, 0.0 }
 0x1b4   :  { %152 = vadd.xlane.f32.xlu1 %v151_v29 }
 0x241   :  { %v153_v30 = vpop.xlane.xlu1 %152 }
 0x242   :  { %v154_v31 = vmax.f32 %v153_v30, 1e-24 }
 0x244   :  { %204 = vrsqrt.f32 %v154_v31 }
 0x24e   :  { %v205_v32 = vpop.eup %204 }
 0x24f   :  { %v156_v33 = vmul.f32 %v205_v32, %v149_v27 }
 0x251   :  { %v157_v34 = vpack.c.bf16 %v156_v33, %v156_v33 }
 0x253   :  { %159 = vst.msk [vmem:[#allocation7] sm:$0x3] %vm158_vm3, %v157_v34 }
 0x254   :  { %261 = shalt.err (!%p258_p6)
}
 0x255   :  { %s262_s25 = scalar_lea.hbm %s375_s5, 32 }
 0x256   :  { %p263_p7 = scmp.ne.s32.totalorder %s375_s5, %s262_s25  ;;  %p266_p8 = scmp.lt.u32.totalorder %s262_s25, %s375_s5 }
 0x258   :  { %p268_p9 = pnand %p266_p8, %p263_p7 }
 0x25a   :  { %271 = shalt.err (!%p268_p9)
}
 0x25b   :  { %169 = dma.vmem_to_hbm [thread:$0]  %s167_s23, 32, %s375_s5, [#allocation4]  }
 0x25c   :  { %276 = dma.done.wait [#allocation4], 32  }
 0x25d   :  { %277 = vsyncadd [#allocation4], 4294967264 }
 0x25e   :  { %173 = vsyncpa [#allocation3], 1 }
 0x25f   :  { %174 = vsyncpa [#allocation6], 1 }
 0x260   :  { %175 = vsyncpa [#allocation4], 1 }

</bundles_post_ra>
